<compile_context>
chip_gen: v7x
topology: tpu7x:2x2x1
jax: 0.10.0
libtpu: 0.0.40
codegen_flags: <defaults>
</compile_context>

<pallas_src>
import jax
import jax.numpy as jnp
from jax.experimental import pallas as pl
from jax.experimental.pallas import tpu as pltpu

LANE = 128        # TPU lane width: hidden/output feature axes padded to this
ROW_PACK = 16     # bf16 LHS packs 16 rows per vreg sublane-pair
TM_CAP = 2048     # per-step batch rows; fits v5e's 16 MiB scoped-VMEM default


def _round_up(n, m):
    return ((n + m - 1) // m) * m


def _pad2d(a, rows, cols):
    return jnp.pad(a, ((0, rows - a.shape[0]), (0, cols - a.shape[1])))


def _choose_batch_tiling(batch):
    """Pick (tm, padded_batch) with tm a multiple of 16 and, when the batch is
    large enough, at least 2 grid steps so v7x megacore can split the work."""
    b16 = _round_up(batch, ROW_PACK)
    if b16 <= 2 * ROW_PACK:
        return b16, b16                       # tiny batch: single step
    n_steps = max(2, -(-b16 // TM_CAP))       # >= 2 steps for megacore split
    tm = _round_up(-(-b16 // n_steps), ROW_PACK)
    return tm, n_steps * tm


def mlp_kernel(x_ref,
               w1_ref, b1_ref,
               w11_ref, b11_ref,
               w12_ref, b12_ref,
               w2_ref, b2_ref,
               w3_ref, b3_ref,
               out_ref):
    """One batch tile of the 5-layer MLP.

    Matmul operands are bf16 (MXU-native); accumulation, bias add, ReLU and
    sigmoid run in f32 on the VPU/EUP.  Output is stored bf16, lane-dense.
    """
    def dense(h_bf16, w_ref, b_ref):
        return jnp.dot(h_bf16, w_ref[...],
                       preferred_element_type=jnp.float32) + b_ref[...]

    # bf16 cast folded into the kernel (saves one HBM round trip on x).
    h = x_ref[...].astype(jnp.bfloat16)
    h = jnp.maximum(dense(h, w1_ref, b1_ref), 0.0).astype(jnp.bfloat16)
    h = jnp.maximum(dense(h, w11_ref, b11_ref), 0.0).astype(jnp.bfloat16)
    h = jnp.maximum(dense(h, w12_ref, b12_ref), 0.0).astype(jnp.bfloat16)
    h = jnp.maximum(dense(h, w2_ref, b2_ref), 0.0).astype(jnp.bfloat16)
    logits = dense(h, w3_ref, b3_ref)

    # sigmoid = 1 / (1 + exp(-x)): exp and approximate reciprocal both issue
    # on the otherwise-idle EUP slot instead of a VPU divide expansion.
    e = jnp.exp(-logits)
    out_ref[...] = pl.reciprocal(1.0 + e, approx=True).astype(out_ref.dtype)


def _prepare_params(params):
    """Zero-pad feature axes to 128 lanes; weights -> bf16, biases stay f32.
    Layer-1 K stays at the true in_dim (x is not feature-padded)."""
    names = ["1", "11", "12", "2", "3"]
    prepped = {}
    prev_rows = params["w1"].shape[0]          # in_dim, left unpadded
    for name in names:
        w = params[f"w{name}"]
        b = params[f"b{name}"]
        cols = _round_up(w.shape[1], LANE)
        prepped[f"w{name}"] = _pad2d(w, prev_rows, cols).astype(jnp.bfloat16)
        prepped[f"b{name}"] = _pad2d(b, 1, cols)            # f32
        prev_rows = cols
    return prepped, prev_rows                  # prev_rows == padded out width


def neural_net_forward(x, params):
    """params: w1,b1,w11,b11,w12,b12,w2,b2,w3,b3; weights [in,out], biases [1,out]."""
    batch, in_dim = x.shape
    out_dim = params["w3"].shape[1]

    prepped, out_p = _prepare_params(params)
    tm, b_pad = _choose_batch_tiling(batch)
    grid = (b_pad // tm,)

    # Only pad batch rows when needed (no feature padding, no wrapper cast).
    xp = x if b_pad == batch else _pad2d(x, b_pad, in_dim)

    names = ["1", "11", "12", "2", "3"]
    weight_args = []
    for name in names:
        weight_args += [prepped[f"w{name}"], prepped[f"b{name}"]]
    args = (xp, *weight_args)

    def const_spec(a):  # full-array block, same block every grid step (VMEM-resident)
        return pl.BlockSpec(a.shape, lambda i: (0, 0))

    in_specs = [pl.BlockSpec((tm, in_dim), lambda i: (i, 0))]
    in_specs += [const_spec(a) for a in weight_args]
    out_specs = pl.BlockSpec((tm, out_p), lambda i: (i, 0))

    flops = 2 * b_pad * sum(int(prepped[f"w{n}"].shape[0]) *
                            int(prepped[f"w{n}"].shape[1]) for n in names)
    bytes_accessed = (int(xp.size) * 4                        # f32 input
                      + b_pad * out_p * 2                     # bf16 output
                      + sum(int(a.size) * a.dtype.itemsize for a in weight_args))
    cost = pl.CostEstimate(flops=int(flops),
                           transcendentals=int(b_pad * out_p),
                           bytes_accessed=int(bytes_accessed))

    out_padded = pl.pallas_call(
        mlp_kernel,
        out_shape=jax.ShapeDtypeStruct((b_pad, out_p), jnp.bfloat16),
        grid=grid,
        in_specs=in_specs,
        out_specs=out_specs,
        compiler_params=pltpu.CompilerParams(
            dimension_semantics=("parallel",)),   # shards batch across TCs on v7x
        cost_estimate=cost,
    )(*args)

    # Slice off padded batch rows / output columns (garbage ~0.5) and return f32.
    return out_padded[:batch, :out_dim].astype(jnp.float32)


def init_params(key, input_dim, output_dim):
    """Deterministic init matching the PyTorch layer shapes.

    nn.Linear(in, out) has weight (out, in), bias (out,). We store the
    transposed weight [in, out] and bias as [1, out] for broadcasting.
    """
    dims = [(input_dim, 100), (100, 100), (100, 100), (100, 50), (50, output_dim)]
    names = ["1", "11", "12", "2", "3"]
    params = {}
    for (fan_in, fan_out), name in zip(dims, names):
        key, kw, kb = jax.random.split(key, 3)
        bound = 1.0 / jnp.sqrt(fan_in)  # PyTorch default uniform init bound
        params[f"w{name}"] = jax.random.uniform(
            kw, (fan_in, fan_out), jnp.float32, -bound, bound)
        params[f"b{name}"] = jax.random.uniform(
            kb, (1, fan_out), jnp.float32, -bound, bound)
    return params


def reference_forward(x, params):
    """JAX reference with the same matmul numerics as the kernel
    (bf16 operands, f32 accumulation / elementwise, f32 sigmoid)."""
    def dense(h, w, b):
        return jnp.dot(h.astype(jnp.bfloat16), w.astype(jnp.bfloat16),
                       preferred_element_type=jnp.float32) + b
    h = jnp.maximum(dense(x, params["w1"], params["b1"]), 0.0)
    h = jnp.maximum(dense(h, params["w11"], params["b11"]), 0.0)
    h = jnp.maximum(dense(h, params["w12"], params["b12"]), 0.0)
    h = jnp.maximum(dense(h, params["w2"], params["b2"]), 0.0)
    return jax.nn.sigmoid(dense(h, params["w3"], params["b3"]))


if __name__ == "__main__":
    key = jax.random.PRNGKey(0)
    key, kx, kp = jax.random.split(key, 3)

    batch, input_dim, output_dim = 8, 32, 4
    x = jax.random.normal(kx, (batch, input_dim), jnp.float32)
    params = init_params(kp, input_dim, output_dim)

    fwd = jax.jit(neural_net_forward)
    out = jax.block_until_ready(fwd(x, params))

    ref = reference_forward(x, params)
    assert out.shape == (batch, output_dim)
    # atol covers the bf16 output store and the approximate EUP reciprocal.
    assert jnp.allclose(out, ref, atol=1e-2), "mismatch vs JAX reference"

    print("KERNEL_OK")
</pallas_src>

<mosaic_0001>
module attributes {stable_mosaic.version = 11 : i64} {
  func.func @mlp_kernel(%arg0: i32, %arg1: memref<16x32xf32, #tpu.memory_space<vmem>>, %arg2: memref<32x128xbf16, #tpu.memory_space<vmem>>, %arg3: memref<1x128xf32, #tpu.memory_space<vmem>>, %arg4: memref<128x128xbf16, #tpu.memory_space<vmem>>, %arg5: memref<1x128xf32, #tpu.memory_space<vmem>>, %arg6: memref<128x128xbf16, #tpu.memory_space<vmem>>, %arg7: memref<1x128xf32, #tpu.memory_space<vmem>>, %arg8: memref<128x128xbf16, #tpu.memory_space<vmem>>, %arg9: memref<1x128xf32, #tpu.memory_space<vmem>>, %arg10: memref<128x128xbf16, #tpu.memory_space<vmem>>, %arg11: memref<1x128xf32, #tpu.memory_space<vmem>>, %arg12: memref<16x128xbf16, #tpu.memory_space<vmem>>) attributes {dimension_semantics = [#tpu.dimension_semantics<parallel>], iteration_bounds = array<i64: 1>, scalar_prefetch = 0 : i64, scratch_operands = 0 : i64, tpu.core_type = #tpu.core_type<tc>, window_params = [{transform_indices = @transform_0, window_bounds = array<i64: 16, 32>}, {pipeline_mode = #tpu.pipeline_mode<synchronous>, transform_indices = @transform_1, window_bounds = array<i64: 32, 128>}, {pipeline_mode = #tpu.pipeline_mode<synchronous>, transform_indices = @transform_2, window_bounds = array<i64: 1, 128>}, {pipeline_mode = #tpu.pipeline_mode<synchronous>, transform_indices = @transform_3, window_bounds = array<i64: 128, 128>}, {pipeline_mode = #tpu.pipeline_mode<synchronous>, transform_indices = @transform_4, window_bounds = array<i64: 1, 128>}, {pipeline_mode = #tpu.pipeline_mode<synchronous>, transform_indices = @transform_5, window_bounds = array<i64: 128, 128>}, {pipeline_mode = #tpu.pipeline_mode<synchronous>, transform_indices = @transform_6, window_bounds = array<i64: 1, 128>}, {pipeline_mode = #tpu.pipeline_mode<synchronous>, transform_indices = @transform_7, window_bounds = array<i64: 128, 128>}, {pipeline_mode = #tpu.pipeline_mode<synchronous>, transform_indices = @transform_8, window_bounds = array<i64: 1, 128>}, {pipeline_mode = #tpu.pipeline_mode<synchronous>, transform_indices = @transform_9, window_bounds = array<i64: 128, 128>}, {pipeline_mode = #tpu.pipeline_mode<synchronous>, transform_indices = @transform_10, window_bounds = array<i64: 1, 128>}, {transform_indices = @transform_11, window_bounds = array<i64: 16, 128>}]} {
    %c0 = arith.constant 0 : index
    %c0_0 = arith.constant 0 : index
    %0 = vector.load %arg1[%c0, %c0_0] : memref<16x32xf32, #tpu.memory_space<vmem>>, vector<16x32xf32>
    %1 = arith.truncf %0 : vector<16x32xf32> to vector<16x32xbf16>
    %c0_1 = arith.constant 0 : index
    %c0_2 = arith.constant 0 : index
    %2 = vector.load %arg2[%c0_1, %c0_2] : memref<32x128xbf16, #tpu.memory_space<vmem>>, vector<32x128xbf16>
    %cst = arith.constant dense<0.000000e+00> : vector<16x128xf32>
    %3 = tpu.matmul %1, %2, %cst {dimension_numbers = #tpu.dot_dimension_numbers<[1], [0], [0], [1], [0, 0, 1, 1], [], []>} : vector<16x32xbf16>, vector<32x128xbf16>, vector<16x128xf32> -> vector<16x128xf32>
    %c0_3 = arith.constant 0 : index
    %c0_4 = arith.constant 0 : index
    %4 = vector.load %arg3[%c0_3, %c0_4] : memref<1x128xf32, #tpu.memory_space<vmem>>, vector<1x128xf32>
    %5 = vector.broadcast %4 : vector<1x128xf32> to vector<16x128xf32>
    %6 = arith.addf %3, %5 : vector<16x128xf32>
    %cst_5 = arith.constant 0.000000e+00 : f32
    %7 = vector.broadcast %cst_5 : f32 to vector<16x128xf32>
    %8 = arith.maximumf %6, %7 : vector<16x128xf32>
    %9 = arith.truncf %8 : vector<16x128xf32> to vector<16x128xbf16>
    %c0_6 = arith.constant 0 : index
    %c0_7 = arith.constant 0 : index
    %10 = vector.load %arg4[%c0_6, %c0_7] : memref<128x128xbf16, #tpu.memory_space<vmem>>, vector<128x128xbf16>
    %cst_8 = arith.constant dense<0.000000e+00> : vector<16x128xf32>
    %11 = tpu.matmul %9, %10, %cst_8 {dimension_numbers = #tpu.dot_dimension_numbers<[1], [0], [0], [1], [0, 0, 1, 1], [], []>} : vector<16x128xbf16>, vector<128x128xbf16>, vector<16x128xf32> -> vector<16x128xf32>
    %c0_9 = arith.constant 0 : index
    %c0_10 = arith.constant 0 : index
    %12 = vector.load %arg5[%c0_9, %c0_10] : memref<1x128xf32, #tpu.memory_space<vmem>>, vector<1x128xf32>
    %13 = vector.broadcast %12 : vector<1x128xf32> to vector<16x128xf32>
    %14 = arith.addf %11, %13 : vector<16x128xf32>
    %cst_11 = arith.constant 0.000000e+00 : f32
    %15 = vector.broadcast %cst_11 : f32 to vector<16x128xf32>
    %16 = arith.maximumf %14, %15 : vector<16x128xf32>
    %17 = arith.truncf %16 : vector<16x128xf32> to vector<16x128xbf16>
    %c0_12 = arith.constant 0 : index
    %c0_13 = arith.constant 0 : index
    %18 = vector.load %arg6[%c0_12, %c0_13] : memref<128x128xbf16, #tpu.memory_space<vmem>>, vector<128x128xbf16>
    %cst_14 = arith.constant dense<0.000000e+00> : vector<16x128xf32>
    %19 = tpu.matmul %17, %18, %cst_14 {dimension_numbers = #tpu.dot_dimension_numbers<[1], [0], [0], [1], [0, 0, 1, 1], [], []>} : vector<16x128xbf16>, vector<128x128xbf16>, vector<16x128xf32> -> vector<16x128xf32>
    %c0_15 = arith.constant 0 : index
    %c0_16 = arith.constant 0 : index
    %20 = vector.load %arg7[%c0_15, %c0_16] : memref<1x128xf32, #tpu.memory_space<vmem>>, vector<1x128xf32>
    %21 = vector.broadcast %20 : vector<1x128xf32> to vector<16x128xf32>
    %22 = arith.addf %19, %21 : vector<16x128xf32>
    %cst_17 = arith.constant 0.000000e+00 : f32
    %23 = vector.broadcast %cst_17 : f32 to vector<16x128xf32>
    %24 = arith.maximumf %22, %23 : vector<16x128xf32>
    %25 = arith.truncf %24 : vector<16x128xf32> to vector<16x128xbf16>
    %c0_18 = arith.constant 0 : index
    %c0_19 = arith.constant 0 : index
    %26 = vector.load %arg8[%c0_18, %c0_19] : memref<128x128xbf16, #tpu.memory_space<vmem>>, vector<128x128xbf16>
    %cst_20 = arith.constant dense<0.000000e+00> : vector<16x128xf32>
    %27 = tpu.matmul %25, %26, %cst_20 {dimension_numbers = #tpu.dot_dimension_numbers<[1], [0], [0], [1], [0, 0, 1, 1], [], []>} : vector<16x128xbf16>, vector<128x128xbf16>, vector<16x128xf32> -> vector<16x128xf32>
    %c0_21 = arith.constant 0 : index
    %c0_22 = arith.constant 0 : index
    %28 = vector.load %arg9[%c0_21, %c0_22] : memref<1x128xf32, #tpu.memory_space<vmem>>, vector<1x128xf32>
    %29 = vector.broadcast %28 : vector<1x128xf32> to vector<16x128xf32>
    %30 = arith.addf %27, %29 : vector<16x128xf32>
    %cst_23 = arith.constant 0.000000e+00 : f32
    %31 = vector.broadcast %cst_23 : f32 to vector<16x128xf32>
    %32 = arith.maximumf %30, %31 : vector<16x128xf32>
    %33 = arith.truncf %32 : vector<16x128xf32> to vector<16x128xbf16>
    %c0_24 = arith.constant 0 : index
    %c0_25 = arith.constant 0 : index
    %34 = vector.load %arg10[%c0_24, %c0_25] : memref<128x128xbf16, #tpu.memory_space<vmem>>, vector<128x128xbf16>
    %cst_26 = arith.constant dense<0.000000e+00> : vector<16x128xf32>
    %35 = tpu.matmul %33, %34, %cst_26 {dimension_numbers = #tpu.dot_dimension_numbers<[1], [0], [0], [1], [0, 0, 1, 1], [], []>} : vector<16x128xbf16>, vector<128x128xbf16>, vector<16x128xf32> -> vector<16x128xf32>
    %c0_27 = arith.constant 0 : index
    %c0_28 = arith.constant 0 : index
    %36 = vector.load %arg11[%c0_27, %c0_28] : memref<1x128xf32, #tpu.memory_space<vmem>>, vector<1x128xf32>
    %37 = vector.broadcast %36 : vector<1x128xf32> to vector<16x128xf32>
    %38 = arith.addf %35, %37 : vector<16x128xf32>
    %cst_29 = arith.constant 0.000000e+00 : f32
    %39 = vector.broadcast %cst_29 : f32 to vector<16x128xf32>
    %40 = arith.subf %39, %38 : vector<16x128xf32>
    %41 = math.exp %40 : vector<16x128xf32>
    %cst_30 = arith.constant 1.000000e+00 : f32
    %42 = vector.broadcast %cst_30 : f32 to vector<16x128xf32>
    %43 = arith.addf %42, %41 : vector<16x128xf32>
    %44 = tpu.reciprocal %43 {approx = true} : vector<16x128xf32> -> vector<16x128xf32>
    %45 = arith.truncf %44 : vector<16x128xf32> to vector<16x128xbf16>
    %c0_31 = arith.constant 0 : index
    %c0_32 = arith.constant 0 : index
    %46 = vector.load %arg12[%c0_31, %c0_32] : memref<16x128xbf16, #tpu.memory_space<vmem>>, vector<16x128xbf16>
    tpu.vector_store %arg12[%c0_31, %c0_32], %45 {strides = array<i32>} : memref<16x128xbf16, #tpu.memory_space<vmem>>, vector<16x128xbf16>,
    return
  }
  func.func @transform_0(%arg0: i32) -> (i32, i32) {
    %c0_i32 = arith.constant 0 : i32
    %c0_i32_0 = arith.constant 0 : i32
    return %arg0, %c0_i32 : i32, i32
  }
  func.func @transform_1(%arg0: i32) -> (i32, i32) {
    %c0_i32 = arith.constant 0 : i32
    %c0_i32_0 = arith.constant 0 : i32
    %c0_i32_1 = arith.constant 0 : i32
    return %c0_i32, %c0_i32_0 : i32, i32
  }
  func.func @transform_2(%arg0: i32) -> (i32, i32) {
    %c0_i32 = arith.constant 0 : i32
    %c0_i32_0 = arith.constant 0 : i32
    %c0_i32_1 = arith.constant 0 : i32
    return %c0_i32, %c0_i32_0 : i32, i32
  }
  func.func @transform_3(%arg0: i32) -> (i32, i32) {
    %c0_i32 = arith.constant 0 : i32
    %c0_i32_0 = arith.constant 0 : i32
    %c0_i32_1 = arith.constant 0 : i32
    return %c0_i32, %c0_i32_0 : i32, i32
  }
  func.func @transform_4(%arg0: i32) -> (i32, i32) {
    %c0_i32 = arith.constant 0 : i32
    %c0_i32_0 = arith.constant 0 : i32
    %c0_i32_1 = arith.constant 0 : i32
    return %c0_i32, %c0_i32_0 : i32, i32
  }
  func.func @transform_5(%arg0: i32) -> (i32, i32) {
    %c0_i32 = arith.constant 0 : i32
    %c0_i32_0 = arith.constant 0 : i32
    %c0_i32_1 = arith.constant 0 : i32
    return %c0_i32, %c0_i32_0 : i32, i32
  }
  func.func @transform_6(%arg0: i32) -> (i32, i32) {
    %c0_i32 = arith.constant 0 : i32
    %c0_i32_0 = arith.constant 0 : i32
    %c0_i32_1 = arith.constant 0 : i32
    return %c0_i32, %c0_i32_0 : i32, i32
  }
  func.func @transform_7(%arg0: i32) -> (i32, i32) {
    %c0_i32 = arith.constant 0 : i32
    %c0_i32_0 = arith.constant 0 : i32
    %c0_i32_1 = arith.constant 0 : i32
    return %c0_i32, %c0_i32_0 : i32, i32
  }
  func.func @transform_8(%arg0: i32) -> (i32, i32) {
    %c0_i32 = arith.constant 0 : i32
    %c0_i32_0 = arith.constant 0 : i32
    %c0_i32_1 = arith.constant 0 : i32
    return %c0_i32, %c0_i32_0 : i32, i32
  }
  func.func @transform_9(%arg0: i32) -> (i32, i32) {
    %c0_i32 = arith.constant 0 : i32
    %c0_i32_0 = arith.constant 0 : i32
    %c0_i32_1 = arith.constant 0 : i32
    return %c0_i32, %c0_i32_0 : i32, i32
  }
  func.func @transform_10(%arg0: i32) -> (i32, i32) {
    %c0_i32 = arith.constant 0 : i32
    %c0_i32_0 = arith.constant 0 : i32
    %c0_i32_1 = arith.constant 0 : i32
    return %c0_i32, %c0_i32_0 : i32, i32
  }
  func.func @transform_11(%arg0: i32) -> (i32, i32) {
    %c0_i32 = arith.constant 0 : i32
    %c0_i32_0 = arith.constant 0 : i32
    return %arg0, %c0_i32 : i32, i32
  }
}

</mosaic_0001>

<bundles_post_ra>
// kernel: neural_net_forward.1
= control target key start
LH: loop header
LB: loop body
LE: loop exit
PB: predicated region body
PF: predicated region fallthrough
CT: control target
= control target key end

     0   :  { %v814_v0 = vmov 0.0   ;;  %vm815_vm0 = vmmov 0   ;;  %vm65_vm1 = vcmask 261120   ;;  %s1046_s1 = inlined_call_operand.vmem [shape: bf16[32,128], index: 1, kind: input, shape index: {}]   ;;  %s1047_s0 = inlined_call_operand.vmem [shape: f32[16,32], index: 0, kind: input, shape index: {}]   ;;  %s1048_s3 = inlined_call_operand.vmem [shape: bf16[128,128], index: 3, kind: input, shape index: {}]   ;;  %s1049_s5 = inlined_call_operand.vmem [shape: bf16[128,128], index: 5, kind: input, shape index: {}]   ;;  %s1050_s2 = inlined_call_operand.vmem [shape: f32[1,128], index: 2, kind: input, shape index: {}]   ;;  %s1051_s7 = inlined_call_operand.vmem [shape: bf16[128,128], index: 7, kind: input, shape index: {}]   ;;  %s1052_s4 = inlined_call_operand.vmem [shape: f32[1,128], index: 4, kind: input, shape index: {}]   ;;  %s1053_s9 = inlined_call_operand.vmem [shape: bf16[128,128], index: 9, kind: input, shape index: {}]   ;;  %s1054_s6 = inlined_call_operand.vmem [shape: f32[1,128], index: 6, kind: input, shape index: {}]   ;;  %s1055_s8 = inlined_call_operand.vmem [shape: f32[1,128], index: 8, kind: input, shape index: {}]   ;;  %s1056_s10 = inlined_call_operand.vmem [shape: f32[1,128], index: 10, kind: input, shape index: {}]   ;;  %s1057_s11 = inlined_call_operand.vmem [shape: bf16[16,128], index: 11, kind: output, shape index: {}]  }
   0x1   :  { %682 = vmatprep.subr.bf16.mxu0 %v814_v0  ;;  %v772_v1 = vld [vmem:[%s1046_s1] sm:$0xff]   ;;  %686 = vmatprep.mubr.msk.bf16.mxu0 %vm815_vm0, %v814_v0  ;;  %v773_v2 = vld [vmem:[%s1046_s1 + $0x8] sm:$0xff]   ;;  %v776_v8 = vld [vmem:[%s1048_s3 + $0x10] sm:$0xff]  }
   0x2   :  { %690 = vmatprep.subr.bf16.mxu1 %v814_v0  ;;  %706 = vmatprep.mubr.msk.bf16.mxu1 %vm815_vm0, %v814_v0  ;;  %v39_v3 = vld [vmem:[%s1047_s0] sm:$0xff]  ;;  %v40_v4 = vld [vmem:[%s1047_s0 + $0x8] sm:$0xff]  ;;  %v777_v9 = vld [vmem:[%s1048_s3 + $0x18] sm:$0xff]  }
   0x3   :  { %683 = vmatpush3.bf16.msra.mxu0 %v772_v1  ;;  %v774_v5 = vld [vmem:[%s1048_s3] sm:$0xff]   ;;  %v41_v6 = vpack.c.bf16 %v40_v4, %v39_v3  ;;  %v775_v7 = vld [vmem:[%s1048_s3 + $0x8] sm:$0xff]   ;;  %v780_v12 = vld [vmem:[%s1048_s3 + $0x30] sm:$0xff]  }
   0x4   :  { %684 = vmatprep.subr.bf16.mxu0 %v814_v0  ;;  %691 = vmatpush3.bf16.msra.mxu1 %v774_v5  ;;  %v778_v10 = vld [vmem:[%s1048_s3 + $0x20] sm:$0xff]   ;;  %v779_v11 = vld [vmem:[%s1048_s3 + $0x28] sm:$0xff]   ;;  %v781_v13 = vld [vmem:[%s1048_s3 + $0x38] sm:$0xff]  }
   0x5   :  { %692 = vmatprep.subr.bf16.mxu1 %v814_v0  ;;  %v782_v14 = vld [vmem:[%s1049_s5] sm:$0xff]   ;;  %v783_v15 = vld [vmem:[%s1049_s5 + $0x8] sm:$0xff]   ;;  %v784_v16 = vld [vmem:[%s1049_s5 + $0x10] sm:$0xff]  }
   0x6   :  { %v785_v17 = vld [vmem:[%s1049_s5 + $0x18] sm:$0xff]   ;;  %v786_v18 = vld [vmem:[%s1049_s5 + $0x20] sm:$0xff]   ;;  %v787_v19 = vld [vmem:[%s1049_s5 + $0x28] sm:$0xff]  }
   0x7   :  { %685 = vmatpush3.bf16.msra.mxu0 %v773_v2  ;;  %v594_v20 = vld [vmem:[%s1050_s2] ss:$0 sm:$0xff]  ;;  %v788_v30 = vld [vmem:[%s1049_s5 + $0x30] sm:$0xff]   ;;  %v789_v31 = vld [vmem:[%s1049_s5 + $0x38] sm:$0xff]  }
   0x8   :  { %710 = vmatprep.subr.bf16.mxu0 %v814_v0  ;;  %693 = vmatpush3.bf16.msra.mxu1 %v775_v7  ;;  %v790_v32 = vld [vmem:[%s1051_s7] sm:$0xff]   ;;  %v791_v33 = vld [vmem:[%s1051_s7 + $0x8] sm:$0xff]   ;;  %v792_v34 = vld [vmem:[%s1051_s7 + $0x10] sm:$0xff]  }
   0x9   :  { %694 = vmatprep.subr.bf16.mxu1 %v814_v0  ;;  %v793_v35 = vld [vmem:[%s1051_s7 + $0x18] sm:$0xff]   ;;  %v794_v36 = vld [vmem:[%s1051_s7 + $0x20] sm:$0xff]   ;;  %v795_v37 = vld [vmem:[%s1051_s7 + $0x28] sm:$0xff]  }
   0xa   :  { %687 = vmatmul.mubr.msk.bf16.vlgmr.msra.gmra.mrb[0].mxu0 %vm65_vm1, %v41_v6  ;;  %v598_v38 = vld [vmem:[%s1052_s4] ss:$0 sm:$0xff]  ;;  %v796_v48 = vld [vmem:[%s1051_s7 + $0x30] sm:$0xff]   ;;  %v797_v49 = vld [vmem:[%s1051_s7 + $0x38] sm:$0xff]  }
   0xb   :  { %726 = vmatprep.mubr.msk.bf16.mxu0 %vm815_vm0, %v814_v0  ;;  %711 = vmatpush3.bf16.msra.mxu0 %v782_v14  ;;  %v798_v50 = vld [vmem:[%s1053_s9] sm:$0xff]   ;;  %v799_v51 = vld [vmem:[%s1053_s9 + $0x8] sm:$0xff]   ;;  %v800_v52 = vld [vmem:[%s1053_s9 + $0x10] sm:$0xff]  }
   0xc   :  { %695 = vmatpush3.bf16.msra.mxu1 %v776_v8  ;;  %712 = vmatprep.subr.bf16.mxu0 %v814_v0  ;;  %v801_v53 = vld [vmem:[%s1053_s9 + $0x18] sm:$0xff]   ;;  %v802_v54 = vld [vmem:[%s1053_s9 + $0x20] sm:$0xff]   ;;  %v803_v55 = vld [vmem:[%s1053_s9 + $0x28] sm:$0xff]  }
   0xd   :  { %696 = vmatprep.subr.bf16.mxu1 %v814_v0  ;;  %v607_v56 = vld [vmem:[%s1054_s6] ss:$0 sm:$0xff]  ;;  %v804_v3 = vld [vmem:[%s1053_s9 + $0x30] sm:$0xff]   ;;  %v805_v4 = vld [vmem:[%s1053_s9 + $0x38] sm:$0xff]  }
   0xe   :  { %v616_v5 = vld [vmem:[%s1055_s8] ss:$0 sm:$0xff] }
   0xf   :  { %713 = vmatpush3.bf16.msra.mxu0 %v783_v15 }
  0x10   :  { %697 = vmatpush3.bf16.msra.mxu1 %v777_v9  ;;  %714 = vmatprep.subr.bf16.mxu0 %v814_v0 }
  0x11   :  { %698 = vmatprep.subr.bf16.mxu1 %v814_v0 }
  0x13   :  { %715 = vmatpush3.bf16.msra.mxu0 %v784_v16 }
  0x14   :  { %699 = vmatpush3.bf16.msra.mxu1 %v778_v10  ;;  %716 = vmatprep.subr.bf16.mxu0 %v814_v0 }
  0x15   :  { %700 = vmatprep.subr.bf16.mxu1 %v814_v0 }
  0x17   :  { %717 = vmatpush3.bf16.msra.mxu0 %v785_v17 }
  0x18   :  { %701 = vmatpush3.bf16.msra.mxu1 %v779_v11  ;;  %718 = vmatprep.subr.bf16.mxu0 %v814_v0 }
  0x19   :  { %702 = vmatprep.subr.bf16.mxu1 %v814_v0 }
  0x1b   :  { %719 = vmatpush3.bf16.msra.mxu0 %v786_v18 }
  0x1c   :  { %703 = vmatpush3.bf16.msra.mxu1 %v780_v12  ;;  %720 = vmatprep.subr.bf16.mxu0 %v814_v0 }
  0x1d   :  { %704 = vmatprep.subr.bf16.mxu1 %v814_v0 }
  0x1f   :  { %721 = vmatpush3.bf16.msra.mxu0 %v787_v19 }
  0x20   :  { %705 = vmatpush3.bf16.msra.mxu1 %v781_v13  ;;  %722 = vmatprep.subr.bf16.mxu0 %v814_v0 }
  0x21   :  { %730 = vmatprep.subr.bf16.mxu1 %v814_v0 }
  0x23   :  { %723 = vmatpush3.bf16.msra.mxu0 %v788_v30 }
  0x24   :  { %724 = vmatprep.subr.bf16.mxu0 %v814_v0 }
  0x27   :  { %725 = vmatpush3.bf16.msra.mxu0 %v789_v31 }
  0x28   :  { %750 = vmatprep.subr.bf16.mxu0 %v814_v0 }
  0xdd   :  { %v103_v21 = vpop.f32.mrb[0].mxu0 }
  0xde   :  { %v104_v22 = vadd.f32 %v594_v20, %v103_v21  ;;  %v688_v23 = vpop.f32.mrb[1].mxu0 }
  0xdf   :  { %v106_v24 = vpop.f32.mrb[2].mxu0 }
  0xe0   :  { %v107_v25 = vadd.f32 %v594_v20, %v106_v24  ;;  %v689_v26 = vpop.f32.mrb[3].mxu0  ;;  %v110_v27 = vmax.f32 %v104_v22, 0.0 }
  0xe2   :  { %v111_v28 = vmax.f32 %v107_v25, 0.0 }
  0xe4   :  { %v112_v29 = vpack.c.bf16 %v111_v28, %v110_v27 }
  0xe6   :  { %707 = vmatmul.mubr.bf16.vlgmr.msra.gmra.mrb[0].mxu1 %v112_v29 }
  0xe7   :  { %746 = vmatprep.mubr.msk.bf16.mxu1 %vm815_vm0, %v814_v0  ;;  %731 = vmatpush3.bf16.msra.mxu1 %v790_v32 }
  0xe8   :  { %732 = vmatprep.subr.bf16.mxu1 %v814_v0 }
  0xeb   :  { %733 = vmatpush3.bf16.msra.mxu1 %v791_v33 }
  0xec   :  { %734 = vmatprep.subr.bf16.mxu1 %v814_v0 }
  0xef   :  { %735 = vmatpush3.bf16.msra.mxu1 %v792_v34 }
  0xf0   :  { %736 = vmatprep.subr.bf16.mxu1 %v814_v0 }
  0xf3   :  { %737 = vmatpush3.bf16.msra.mxu1 %v793_v35 }
  0xf4   :  { %738 = vmatprep.subr.bf16.mxu1 %v814_v0 }
  0xf7   :  { %739 = vmatpush3.bf16.msra.mxu1 %v794_v36 }
  0xf8   :  { %740 = vmatprep.subr.bf16.mxu1 %v814_v0 }
  0xfb   :  { %741 = vmatpush3.bf16.msra.mxu1 %v795_v37 }
  0xfc   :  { %742 = vmatprep.subr.bf16.mxu1 %v814_v0 }
  0xff   :  { %743 = vmatpush3.bf16.msra.mxu1 %v796_v48 }
 0x100   :  { %744 = vmatprep.subr.bf16.mxu1 %v814_v0 }
 0x103   :  { %745 = vmatpush3.bf16.msra.mxu1 %v797_v49 }
 0x1b9   :  { %v218_v39 = vpop.f32.mrb[0].mxu1 }
 0x1ba   :  { %v219_v40 = vadd.f32 %v598_v38, %v218_v39  ;;  %v708_v41 = vpop.f32.mrb[1].mxu1 }
 0x1bb   :  { %v221_v42 = vpop.f32.mrb[2].mxu1 }
 0x1bc   :  { %v222_v43 = vadd.f32 %v598_v38, %v221_v42  ;;  %v709_v44 = vpop.f32.mrb[3].mxu1  ;;  %v225_v45 = vmax.f32 %v219_v40, 0.0 }
 0x1be   :  { %v226_v46 = vmax.f32 %v222_v43, 0.0 }
 0x1c0   :  { %v227_v47 = vpack.c.bf16 %v226_v46, %v225_v45 }
 0x1c2   :  { %727 = vmatmul.mubr.bf16.vlgmr.msra.gmra.mrb[4].mxu0 %v227_v47 }
 0x1c3   :  { %766 = vmatprep.mubr.msk.bf16.mxu0 %vm815_vm0, %v814_v0  ;;  %751 = vmatpush3.bf16.msra.mxu0 %v798_v50 }
 0x1c4   :  { %752 = vmatprep.subr.bf16.mxu0 %v814_v0 }
 0x1c7   :  { %753 = vmatpush3.bf16.msra.mxu0 %v799_v51 }
 0x1c8   :  { %754 = vmatprep.subr.bf16.mxu0 %v814_v0 }
 0x1cb   :  { %755 = vmatpush3.bf16.msra.mxu0 %v800_v52 }
 0x1cc   :  { %756 = vmatprep.subr.bf16.mxu0 %v814_v0 }
 0x1cf   :  { %757 = vmatpush3.bf16.msra.mxu0 %v801_v53 }
 0x1d0   :  { %758 = vmatprep.subr.bf16.mxu0 %v814_v0 }
 0x1d3   :  { %759 = vmatpush3.bf16.msra.mxu0 %v802_v54 }
 0x1d4   :  { %760 = vmatprep.subr.bf16.mxu0 %v814_v0 }
 0x1d7   :  { %761 = vmatpush3.bf16.msra.mxu0 %v803_v55 }
 0x1d8   :  { %762 = vmatprep.subr.bf16.mxu0 %v814_v0 }
 0x1db   :  { %763 = vmatpush3.bf16.msra.mxu0 %v804_v3 }
 0x1dc   :  { %764 = vmatprep.subr.bf16.mxu0 %v814_v0  ;;  %v625_v0 = vld [vmem:[%s1056_s10] ss:$0 sm:$0xff] }
 0x1df   :  { %765 = vmatpush3.bf16.msra.mxu0 %v805_v4 }
 0x295   :  { %v333_v57 = vpop.f32.mrb[4].mxu0 }
 0x296   :  { %v334_v58 = vadd.f32 %v607_v56, %v333_v57  ;;  %v728_v59 = vpop.f32.mrb[5].mxu0 }
 0x297   :  { %v336_v60 = vpop.f32.mrb[6].mxu0 }
 0x298   :  { %v337_v61 = vadd.f32 %v607_v56, %v336_v60  ;;  %v729_v62 = vpop.f32.mrb[7].mxu0  ;;  %v340_v63 = vmax.f32 %v334_v58, 0.0 }
 0x29a   :  { %v341_v1 = vmax.f32 %v337_v61, 0.0 }
 0x29c   :  { %v342_v2 = vpack.c.bf16 %v341_v1, %v340_v63 }
 0x29e   :  { %747 = vmatmul.mubr.bf16.vlgmr.msra.gmra.mrb[4].mxu1 %v342_v2 }
 0x371   :  { %v448_v6 = vpop.f32.mrb[4].mxu1 }
 0x372   :  { %v449_v7 = vadd.f32 %v616_v5, %v448_v6  ;;  %v748_v8 = vpop.f32.mrb[5].mxu1 }
 0x373   :  { %v451_v9 = vpop.f32.mrb[6].mxu1 }
 0x374   :  { %v452_v10 = vadd.f32 %v616_v5, %v451_v9  ;;  %v749_v11 = vpop.f32.mrb[7].mxu1  ;;  %v455_v12 = vmax.f32 %v449_v7, 0.0 }
 0x376   :  { %v456_v13 = vmax.f32 %v452_v10, 0.0 }
 0x378   :  { %v457_v14 = vpack.c.bf16 %v456_v13, %v455_v12 }
 0x37a   :  { %767 = vmatmul.mubr.bf16.vlgmr.msra.gmra.mrb[8].mxu0 %v457_v14 }
 0x44d   :  { %v563_v15 = vpop.f32.mrb[8].mxu0 }
 0x44e   :  { %v564_v16 = vadd.f32 %v625_v0, %v563_v15  ;;  %v768_v17 = vpop.f32.mrb[9].mxu0 }
 0x44f   :  { %v566_v18 = vpop.f32.mrb[10].mxu0 }
 0x450   :  { %v570_v19 = vsub.f32 0.0, %v564_v16  ;;  %v567_v20 = vadd.f32 %v625_v0, %v566_v18  ;;  %v769_v21 = vpop.f32.mrb[11].mxu0 }
 0x452   :  { %v572_v22 = vmul.f32 1.442695, %v570_v19  ;;  %v571_v23 = vsub.f32 0.0, %v567_v20 }
 0x454   :  { %806 = vpow2.f32 %v572_v22  ;;  %v574_v24 = vmul.f32 1.442695, %v571_v23 }
 0x456   :  { %808 = vpow2.f32 %v574_v24 }
 0x45e   :  { %v807_v25 = vpop.eup %806 }
 0x45f   :  { %v576_v26 = vadd.f32 1.0, %v807_v25 }
 0x460   :  { %v809_v27 = vpop.eup %808 }
 0x461   :  { %v577_v28 = vadd.f32 1.0, %v809_v27  ;;  %810 = vrcp.f32 %v576_v26 }
 0x463   :  { %812 = vrcp.f32 %v577_v28 }
 0x46b   :  { %v811_v29 = vpop.eup %810 }
 0x46d   :  { %v813_v30 = vpop.eup %812 }
 0x46e   :  { %v641_v31 = vpack.c.bf16 %v813_v30, %v811_v29 }
 0x470   :  { %642 = vst [vmem:[%s1057_s11] sm:$0xff] %v641_v31  }

</bundles_post_ra>
